<compile_context>
chip_gen: v7x
topology: tpu7x:2x2x1
jax: 0.10.0
libtpu: 0.0.40
codegen_flags: <defaults>
</compile_context>

<pallas_src>
import functools

import jax
import jax.numpy as jnp
from jax.experimental import pallas as pl
from jax.experimental.pallas import tpu as pltpu


def _round_up(n: int, m: int) -> int:
    return ((n + m - 1) // m) * m


def _vnet_kernel(x_ref, w1_ref, w2_ref, w3_ref, b_ref, o_ref):
    """One batch tile (batch on lanes).

    x_ref : (IN, TB)          float32
    w1_ref: (HIDDEN, IN)      float32   (fc1 weight, (out, in) layout)
    w2_ref: (HIDDEN, HIDDEN)  float32   (fc2 weight, (out, in) layout)
    w3_ref: (HIDDEN, OUT)     float32   (fc3 weight, (in, out) layout)
    b_ref : (pad(2H+OUT, 8), 1) float32 packed [b1; b2; b3] column vector
    o_ref : (OUT, TB)         float32
    """
    hidden = w1_ref.shape[0]
    in_dim = w1_ref.shape[1]
    out_dim = w3_ref.shape[1]
    tb = x_ref.shape[1]

    b1 = b_ref[0:hidden, :]                            # (H, 1)
    b2 = b_ref[hidden:2 * hidden, :]                   # (H, 1)
    b3 = b_ref[2 * hidden:2 * hidden + out_dim, :]     # (OUT, 1)

    x = x_ref[...].astype(jnp.float32)                 # (IN, TB)
    w1 = w1_ref[...].astype(jnp.float32)               # (H, IN)

    # ---- fc1: K=IN(=4) -> too narrow for the MXU; do IN broadcast FMAs on the VPU.
    acc1 = jnp.broadcast_to(b1, (hidden, tb))
    for k in range(in_dim):                            # static unroll, IN is tiny
        acc1 = acc1 + w1[:, k:k + 1] * x[k:k + 1, :]
    h1 = jnp.maximum(acc1, 0.0)                        # (H, TB) f32

    # ---- fc2: the only real matmul (HxH) -> MXU, F32 x F32 = F32.
    h2 = jnp.dot(w2_ref[...].astype(jnp.float32), h1,
                 preferred_element_type=jnp.float32)
    h2 = jnp.maximum(h2 + b2, 0.0)                     # (H, TB) f32

    # ---- fc3: N=OUT(=1) -> elementwise multiply + cross-sublane reduce (XLU).
    w3 = w3_ref[...].astype(jnp.float32)               # (H, OUT)
    rows = [jnp.sum(w3[:, o:o + 1] * h2, axis=0, keepdims=True)
            for o in range(out_dim)]                   # each (1, TB)
    out = rows[0] if out_dim == 1 else jnp.concatenate(rows, axis=0)
    o_ref[...] = (out + b3).astype(o_ref.dtype)


@functools.partial(jax.jit, static_argnames=("tb",))
def v_net_forward(x, params, *, tb=1024):
    """x: (B, IN) float32. params: dict with w1,b1,w2,b2,w3,b3 (weights (fan_in, fan_out))."""
    w1, b1, w2, b2, w3, b3 = (params[k] for k in ("w1", "b1", "w2", "b2", "w3", "b3"))
    B, in_dim = x.shape
    hidden = w1.shape[1]
    out_dim = w3.shape[1]

    # --- layout plumbing (wrapper-side): batch onto the lane axis, weights to
    #     kernel layouts, biases packed into one column vector.
    x_t = x.T.astype(jnp.float32)                       # (IN, B)
    w1_k = w1.T.astype(jnp.float32)                     # (H, IN)
    w2_k = w2.T.astype(jnp.float32)                     # (H, H)
    w3_k = w3.astype(jnp.float32)                       # (H, OUT)
    bias = jnp.concatenate(
        [b1.reshape(hidden, 1), b2.reshape(hidden, 1), b3.reshape(out_dim, 1)],
        axis=0).astype(jnp.float32)                     # (2H+OUT, 1)
    bias_rows = _round_up(2 * hidden + out_dim, 8)
    bias = jnp.pad(bias, ((0, bias_rows - bias.shape[0]), (0, 0)))

    # --- batch tiling: lane-aligned tile, batch padded up to a whole number of tiles.
    TB = _round_up(min(int(tb), _round_up(B, 128)), 128)
    Bp = _round_up(B, TB)
    if Bp != B:
        x_t = jnp.pad(x_t, ((0, 0), (0, Bp - B)))
    n_tiles = Bp // TB

    out_t = pl.pallas_call(
        _vnet_kernel,
        out_shape=jax.ShapeDtypeStruct((out_dim, Bp), jnp.float32),
        grid_spec=pltpu.PrefetchScalarGridSpec(
            num_scalar_prefetch=0,
            grid=(n_tiles,),
            in_specs=[
                pl.BlockSpec((in_dim, TB), lambda i: (0, i)),       # x tile (pipelined)
                pl.BlockSpec((hidden, in_dim), lambda i: (0, 0)),   # w1 (resident)
                pl.BlockSpec((hidden, hidden), lambda i: (0, 0)),   # w2 (resident)
                pl.BlockSpec((hidden, out_dim), lambda i: (0, 0)),  # w3 (resident)
                pl.BlockSpec((bias_rows, 1), lambda i: (0, 0)),     # packed biases
            ],
            out_specs=pl.BlockSpec((out_dim, TB), lambda i: (0, i)),
        ),
        compiler_params=pltpu.CompilerParams(
            dimension_semantics=("parallel",),          # shard batch tiles across TCs
        ),
    )(x_t, w1_k, w2_k, w3_k, bias)

    # Back to the PyTorch-facing (B, OUT) layout.
    return out_t[:, :B].T


def init_v_net_params(key, input=4, hidden=64, output=1):
    """nn.Linear-style init (U[-1/sqrt(fan_in), 1/sqrt(fan_in)]).
    Weights stored (fan_in, fan_out); biases (1, fan_out)."""
    def linear(k, fan_in, fan_out):
        kw, kb = jax.random.split(k)
        bound = 1.0 / jnp.sqrt(jnp.float32(fan_in))
        w = jax.random.uniform(kw, (fan_in, fan_out), jnp.float32, -bound, bound)
        b = jax.random.uniform(kb, (1, fan_out), jnp.float32, -bound, bound)
        return w, b

    k1, k2, k3 = jax.random.split(key, 3)
    w1, b1 = linear(k1, input, hidden)
    w2, b2 = linear(k2, hidden, hidden)
    w3, b3 = linear(k3, hidden, output)
    return {"w1": w1, "b1": b1, "w2": w2, "b2": b2, "w3": w3, "b3": b3}


def v_net_reference(x, p):
    def dense(a, w):
        return jnp.dot(a, w, preferred_element_type=jnp.float32,
                       precision=jax.lax.Precision.HIGHEST)

    h1 = jnp.maximum(dense(x, p["w1"]) + p["b1"], 0.0)
    h2 = jnp.maximum(dense(h1, p["w2"]) + p["b2"], 0.0)
    return dense(h2, p["w3"]) + p["b3"]


if __name__ == "__main__":
    key = jax.random.PRNGKey(0)
    k_param, k_x, k_big = jax.random.split(key, 3)

    B, IN, HIDDEN, OUT = 8, 4, 64, 1
    params = init_v_net_params(k_param, input=IN, hidden=HIDDEN, output=OUT)
    x = jax.random.normal(k_x, (B, IN), jnp.float32)    # CartPole states

    # Small batch -> single 128-lane tile.
    y = jax.block_until_ready(v_net_forward(x, params))
    y_ref = v_net_reference(x, params)
    assert y.shape == (B, OUT)
    assert jnp.allclose(y, y_ref, atol=1e-4, rtol=1e-4)

    # Larger batch -> multiple grid steps (exercises tiling / padding / parallel axis).
    x_big = jax.random.normal(k_big, (300, IN), jnp.float32)
    y_big = jax.block_until_ready(v_net_forward(x_big, params, tb=128))
    assert y_big.shape == (300, OUT)
    assert jnp.allclose(y_big, v_net_reference(x_big, params), atol=1e-4, rtol=1e-4)

    print("KERNEL_OK")
</pallas_src>

<mosaic_0001>
module attributes {stable_mosaic.version = 11 : i64} {
  func.func @_vnet_kernel(%arg0: i32, %arg1: memref<4x128xf32, #tpu.memory_space<vmem>>, %arg2: memref<64x4xf32, #tpu.memory_space<vmem>>, %arg3: memref<64x64xf32, #tpu.memory_space<vmem>>, %arg4: memref<64x1xf32, #tpu.memory_space<vmem>>, %arg5: memref<136x1xf32, #tpu.memory_space<vmem>>, %arg6: memref<1x128xf32, #tpu.memory_space<vmem>>) attributes {dimension_semantics = [#tpu.dimension_semantics<parallel>], iteration_bounds = array<i64: 1>, scalar_prefetch = 0 : i64, scratch_operands = 0 : i64, tpu.core_type = #tpu.core_type<tc>, window_params = [{transform_indices = @transform_0, window_bounds = array<i64: 4, 128>}, {pipeline_mode = #tpu.pipeline_mode<synchronous>, transform_indices = @transform_1, window_bounds = array<i64: 64, 4>}, {pipeline_mode = #tpu.pipeline_mode<synchronous>, transform_indices = @transform_2, window_bounds = array<i64: 64, 64>}, {pipeline_mode = #tpu.pipeline_mode<synchronous>, transform_indices = @transform_3, window_bounds = array<i64: 64, 1>}, {pipeline_mode = #tpu.pipeline_mode<synchronous>, transform_indices = @transform_4, window_bounds = array<i64: 136, 1>}, {transform_indices = @transform_5, window_bounds = array<i64: 1, 128>}]} {
    %c0 = arith.constant 0 : index
    %c0_0 = arith.constant 0 : index
    %0 = vector.load %arg5[%c0, %c0_0] : memref<136x1xf32, #tpu.memory_space<vmem>>, vector<64x1xf32>
    %c64 = arith.constant 64 : index
    %c0_1 = arith.constant 0 : index
    %1 = vector.load %arg5[%c64, %c0_1] : memref<136x1xf32, #tpu.memory_space<vmem>>, vector<64x1xf32>
    %c128 = arith.constant 128 : index
    %c0_2 = arith.constant 0 : index
    %2 = vector.load %arg5[%c128, %c0_2] : memref<136x1xf32, #tpu.memory_space<vmem>>, vector<1x1xf32>
    %c0_3 = arith.constant 0 : index
    %c0_4 = arith.constant 0 : index
    %3 = vector.load %arg1[%c0_3, %c0_4] : memref<4x128xf32, #tpu.memory_space<vmem>>, vector<4x128xf32>
    %c0_5 = arith.constant 0 : index
    %c0_6 = arith.constant 0 : index
    %4 = vector.load %arg2[%c0_5, %c0_6] : memref<64x4xf32, #tpu.memory_space<vmem>>, vector<64x4xf32>
    %5 = vector.shape_cast %0 : vector<64x1xf32> to vector<64x1xf32>
    %6 = vector.broadcast %5 : vector<64x1xf32> to vector<64x128xf32>
    %7 = vector.extract_strided_slice %4 {offsets = [0, 0], sizes = [64, 1], strides = [1, 1]} : vector<64x4xf32> to vector<64x1xf32>
    %8 = vector.extract_strided_slice %3 {offsets = [0, 0], sizes = [1, 128], strides = [1, 1]} : vector<4x128xf32> to vector<1x128xf32>
    %9 = vector.broadcast %7 : vector<64x1xf32> to vector<64x128xf32>
    %10 = vector.broadcast %8 : vector<1x128xf32> to vector<64x128xf32>
    %11 = arith.mulf %9, %10 : vector<64x128xf32>
    %12 = arith.addf %6, %11 : vector<64x128xf32>
    %13 = vector.extract_strided_slice %4 {offsets = [0, 1], sizes = [64, 1], strides = [1, 1]} : vector<64x4xf32> to vector<64x1xf32>
    %14 = vector.extract_strided_slice %3 {offsets = [1, 0], sizes = [1, 128], strides = [1, 1]} : vector<4x128xf32> to vector<1x128xf32>
    %15 = vector.broadcast %13 : vector<64x1xf32> to vector<64x128xf32>
    %16 = vector.broadcast %14 : vector<1x128xf32> to vector<64x128xf32>
    %17 = arith.mulf %15, %16 : vector<64x128xf32>
    %18 = arith.addf %12, %17 : vector<64x128xf32>
    %19 = vector.extract_strided_slice %4 {offsets = [0, 2], sizes = [64, 1], strides = [1, 1]} : vector<64x4xf32> to vector<64x1xf32>
    %20 = vector.extract_strided_slice %3 {offsets = [2, 0], sizes = [1, 128], strides = [1, 1]} : vector<4x128xf32> to vector<1x128xf32>
    %21 = vector.broadcast %19 : vector<64x1xf32> to vector<64x128xf32>
    %22 = vector.broadcast %20 : vector<1x128xf32> to vector<64x128xf32>
    %23 = arith.mulf %21, %22 : vector<64x128xf32>
    %24 = arith.addf %18, %23 : vector<64x128xf32>
    %25 = vector.extract_strided_slice %4 {offsets = [0, 3], sizes = [64, 1], strides = [1, 1]} : vector<64x4xf32> to vector<64x1xf32>
    %26 = vector.extract_strided_slice %3 {offsets = [3, 0], sizes = [1, 128], strides = [1, 1]} : vector<4x128xf32> to vector<1x128xf32>
    %27 = vector.broadcast %25 : vector<64x1xf32> to vector<64x128xf32>
    %28 = vector.broadcast %26 : vector<1x128xf32> to vector<64x128xf32>
    %29 = arith.mulf %27, %28 : vector<64x128xf32>
    %30 = arith.addf %24, %29 : vector<64x128xf32>
    %cst = arith.constant 0.000000e+00 : f32
    %31 = vector.broadcast %cst : f32 to vector<64x128xf32>
    %32 = arith.maximumf %30, %31 : vector<64x128xf32>
    %c0_7 = arith.constant 0 : index
    %c0_8 = arith.constant 0 : index
    %33 = vector.load %arg3[%c0_7, %c0_8] : memref<64x64xf32, #tpu.memory_space<vmem>>, vector<64x64xf32>
    %cst_9 = arith.constant dense<0.000000e+00> : vector<64x128xf32>
    %34 = tpu.matmul %33, %32, %cst_9 {dimension_numbers = #tpu.dot_dimension_numbers<[1], [0], [0], [1], [0, 0, 1, 1], [], []>} : vector<64x64xf32>, vector<64x128xf32>, vector<64x128xf32> -> vector<64x128xf32>
    %35 = vector.broadcast %1 : vector<64x1xf32> to vector<64x128xf32>
    %36 = arith.addf %34, %35 : vector<64x128xf32>
    %cst_10 = arith.constant 0.000000e+00 : f32
    %37 = vector.broadcast %cst_10 : f32 to vector<64x128xf32>
    %38 = arith.maximumf %36, %37 : vector<64x128xf32>
    %c0_11 = arith.constant 0 : index
    %c0_12 = arith.constant 0 : index
    %39 = vector.load %arg4[%c0_11, %c0_12] : memref<64x1xf32, #tpu.memory_space<vmem>>, vector<64x1xf32>
    %40 = vector.broadcast %39 : vector<64x1xf32> to vector<64x128xf32>
    %41 = arith.mulf %40, %38 : vector<64x128xf32>
    %cst_13 = arith.constant dense<0.000000e+00> : vector<128xf32>
    %42 = vector.multi_reduction <add>, %41, %cst_13 [0] : vector<64x128xf32> to vector<128xf32>
    %43 = vector.shape_cast %42 : vector<128xf32> to vector<1x128xf32>
    %44 = vector.broadcast %2 : vector<1x1xf32> to vector<1x128xf32>
    %45 = arith.addf %43, %44 : vector<1x128xf32>
    %c0_14 = arith.constant 0 : index
    %c0_15 = arith.constant 0 : index
    %46 = vector.load %arg6[%c0_14, %c0_15] : memref<1x128xf32, #tpu.memory_space<vmem>>, vector<1x128xf32>
    tpu.vector_store %arg6[%c0_14, %c0_15], %45 {strides = array<i32>} : memref<1x128xf32, #tpu.memory_space<vmem>>, vector<1x128xf32>,
    return
  }
  func.func @transform_0(%arg0: i32) -> (i32, i32) {
    %c0_i32 = arith.constant 0 : i32
    %c0_i32_0 = arith.constant 0 : i32
    return %c0_i32, %arg0 : i32, i32
  }
  func.func @transform_1(%arg0: i32) -> (i32, i32) {
    %c0_i32 = arith.constant 0 : i32
    %c0_i32_0 = arith.constant 0 : i32
    %c0_i32_1 = arith.constant 0 : i32
    return %c0_i32, %c0_i32_0 : i32, i32
  }
  func.func @transform_2(%arg0: i32) -> (i32, i32) {
    %c0_i32 = arith.constant 0 : i32
    %c0_i32_0 = arith.constant 0 : i32
    %c0_i32_1 = arith.constant 0 : i32
    return %c0_i32, %c0_i32_0 : i32, i32
  }
  func.func @transform_3(%arg0: i32) -> (i32, i32) {
    %c0_i32 = arith.constant 0 : i32
    %c0_i32_0 = arith.constant 0 : i32
    %c0_i32_1 = arith.constant 0 : i32
    return %c0_i32, %c0_i32_0 : i32, i32
  }
  func.func @transform_4(%arg0: i32) -> (i32, i32) {
    %c0_i32 = arith.constant 0 : i32
    %c0_i32_0 = arith.constant 0 : i32
    %c0_i32_1 = arith.constant 0 : i32
    return %c0_i32, %c0_i32_0 : i32, i32
  }
  func.func @transform_5(%arg0: i32) -> (i32, i32) {
    %c0_i32 = arith.constant 0 : i32
    %c0_i32_0 = arith.constant 0 : i32
    return %c0_i32, %arg0 : i32, i32
  }
}

</mosaic_0001>

<bundles_post_ra>
// kernel: v_net_forward.1
= control target key start
LH: loop header
LB: loop body
LE: loop exit
PB: predicated region body
PF: predicated region fallthrough
CT: control target
= control target key end

     0   :  { %v681_v0 = vmov 2   ;;  %v682_v1 = vmov 0   ;;  %v683_v7 = vmov 1   ;;  %v684_v14 = vmov 3   ;;  %s934_s4 = inlined_call_operand.vmem [shape: f32[136,1], index: 4, kind: input, shape index: {}]   ;;  %s935_s1 = inlined_call_operand.vmem [shape: f32[64,4], index: 1, kind: input, shape index: {}]   ;;  %s936_s2 = inlined_call_operand.vmem [shape: f32[64,64], index: 2, kind: input, shape index: {}]   ;;  %s937_s3 = inlined_call_operand.vmem [shape: f32[64,1], index: 3, kind: input, shape index: {}]   ;;  %s938_s0 = inlined_call_operand.vmem [shape: f32[4,128], index: 0, kind: input, shape index: {}]   ;;  %s939_s5 = inlined_call_operand.vmem [shape: f32[1,128], index: 5, kind: output, shape index: {}]  }
   0x1   :  { %664 = vset.pattern.permute.xlu0 %v681_v0  ;;  %656 = vset.pattern.permute.xlu1 %v682_v1  ;;  %v20_v2 = vld [vmem:[%s934_s4] sm:$0xff]  ;;  %v40_v3 = vld [vmem:[%s935_s1 + $0x10] sm:$0xff]  ;;  %v21_v4 = vld [vmem:[%s934_s4 + $0x8] sm:$0xff]  ;;  %vm358_vm0 = vcmask 523264   ;;  %v126_v41 = vlaneseq }
   0x2   :  { %48 = vperm.xlu1 %656, %v20_v2   ;;  %207 = vperm.xlu0 %664, %v40_v3   ;;  %v38_v5 = vld [vmem:[%s935_s1] sm:$0xff]  ;;  %v39_v6 = vld [vmem:[%s935_s1 + $0x8] sm:$0xff]  ;;  %v41_v8 = vld [vmem:[%s935_s1 + $0x18] sm:$0xff] }
   0x3   :  { %v22_v9 = vld [vmem:[%s934_s4 + $0x10] sm:$0xff]  ;;  %v25_v10 = vld [vmem:[%s934_s4 + $0x28] sm:$0xff]  ;;  %v45_v11 = vld [vmem:[%s935_s1 + $0x38] sm:$0xff]  ;;  %v127_v46 = vshrl.u32 %v126_v41, 7 }
   0x4   :  { %v23_v12 = vld [vmem:[%s934_s4 + $0x18] sm:$0xff]  ;;  %v26_v13 = vld [vmem:[%s934_s4 + $0x30] sm:$0xff]  ;;  %v42_v16 = vld [vmem:[%s935_s1 + $0x20] sm:$0xff] }
   0x5   :  { %v44_v15 = vld [vmem:[%s935_s1 + $0x30] sm:$0xff]  ;;  %v43_v17 = vld [vmem:[%s935_s1 + $0x28] sm:$0xff]  ;;  %v24_v18 = vld [vmem:[%s934_s4 + $0x20] sm:$0xff]  ;;  %v128_v51 = vsub.s32 0, %v127_v46  ;;  %v180_v58 = vsub.s32 1, %v127_v46  ;;  %v232_v61 = vsub.s32 2, %v127_v46 }
   0x6   :  { %53 = vperm.xlu1 %656, %v21_v4   ;;  %665 = vset.pattern.permute.xlu0 %v682_v1  ;;  %v27_v19 = vld [vmem:[%s934_s4 + $0x38] sm:$0xff]  ;;  %v310_v20 = vld [vmem:[%s936_s2] sm:$0xff]  ;;  %v29_v24 = vld [vmem:[%s934_s4 + $0x48] sm:$0xff]  ;;  %v284_v2 = vsub.s32 3, %v127_v46 }
   0x7   :  { %88 = vperm.xlu0 %665, %v38_v5   ;;  %v314_v21 = vld [vmem:[%s936_s2 + $0x20] sm:$0xff]  ;;  %616 = vmatprep.mubr.msk.f32.mxu0 %vm358_vm0, %v310_v20  ;;  %v30_v28 = vld [vmem:[%s934_s4 + $0x50] sm:$0xff]  ;;  %v31_v29 = vld [vmem:[%s934_s4 + $0x58] sm:$0xff] }
   0x8   :  { %622 = vmatprep.mubr.msk.f32.mxu1 %vm358_vm0, %v314_v21  ;;  %v28_v25 = vld [vmem:[%s934_s4 + $0x40] sm:$0xff]  ;;  %v497_v33 = vld [vmem:[%s937_s3 + $0x8] sm:$0xff]  ;;  %v498_v36 = vld [vmem:[%s937_s3 + $0x10] sm:$0xff] }
   0x9   :  { %v496_v32 = vld [vmem:[%s937_s3] sm:$0xff]  ;;  %v33_v39 = vld [vmem:[%s934_s4 + $0x68] sm:$0xff]  ;;  %v499_v40 = vld [vmem:[%s937_s3 + $0x18] sm:$0xff] }
   0xa   :  { %657 = vset.pattern.permute.xlu1 %v683_v7  ;;  %v32_v35 = vld [vmem:[%s934_s4 + $0x60] sm:$0xff]  ;;  %v34_v44 = vld [vmem:[%s934_s4 + $0x70] sm:$0xff]  ;;  %v35_v49 = vld [vmem:[%s934_s4 + $0x78] sm:$0xff] }
   0xb   :  { %151 = vperm.xlu1 %657, %v39_v6   ;;  %93 = vperm.xlu0 %665, %v39_v6   ;;  %v500_v45 = vld [vmem:[%s937_s3 + $0x20] sm:$0xff]  ;;  %v501_v50 = vld [vmem:[%s937_s3 + $0x28] sm:$0xff]  ;;  %v502_v55 = vld [vmem:[%s937_s3 + $0x30] sm:$0xff] }
   0xc   :  { %v37_v52 = vld [vmem:[%s938_s0] sm:$0xf]  ;;  %v503_v56 = vld [vmem:[%s937_s3 + $0x38] sm:$0xff] }
   0xd   :  { %v855_v57 = vrot.slane %v37_v52, %v128_v51  ;;  %v36_v60 = vld [vmem:[%s934_s4 + $0x80] sm:$0x1]  ;;  %v861_v63 = vrot.slane %v37_v52, %v180_v58 }
   0xf   :  { %658 = vset.pattern.permute.xlu1 %v682_v1  ;;  %103 = vperm.xlu0 %665, %v41_v8  }
  0x10   :  { %98 = vperm.xlu1 %658, %v40_v3  }
  0x13   :  { %58 = vperm.xlu0 %665, %v22_v9   ;;  %v868_v9 = vrot.slane %v37_v52, %v284_v2 }
  0x14   :  { %659 = vset.pattern.permute.xlu1 %v681_v0 }
  0x15   :  { %199 = vperm.xlu1 %659, %v38_v5  }
  0x17   :  { %73 = vperm.xlu0 %665, %v25_v10  }
  0x19   :  { %203 = vperm.xlu1 %659, %v39_v6  }
  0x1b   :  { %123 = vperm.xlu0 %665, %v45_v11  }
  0x1d   :  { %660 = vset.pattern.permute.xlu1 %v682_v1 }
  0x1e   :  { %63 = vperm.xlu1 %660, %v23_v12  }
  0x1f   :  { %78 = vperm.xlu0 %665, %v26_v13  }
  0x22   :  { %661 = vset.pattern.permute.xlu1 %v683_v7 }
  0x23   :  { %672 = vset.pattern.permute.xlu0 %v683_v7  ;;  %159 = vperm.xlu1 %661, %v41_v8  }
  0x24   :  { %147 = vperm.xlu0 %672, %v38_v5  }
  0x27   :  { %662 = vset.pattern.permute.xlu1 %v684_v14 }
  0x28   :  { %155 = vperm.xlu0 %672, %v40_v3   ;;  %251 = vperm.xlu1 %662, %v38_v5  }
  0x2c   :  { %171 = vperm.xlu0 %672, %v44_v15   ;;  %663 = vset.pattern.permute.xlu1 %v682_v1 }
  0x2d   :  { %108 = vperm.xlu1 %663, %v42_v16  }
  0x30   :  { %674 = vset.pattern.permute.xlu0 %v684_v14 }
  0x31   :  { %255 = vperm.xlu0 %674, %v39_v6   ;;  %113 = vperm.xlu1 %663, %v43_v17  }
  0x35   :  { %259 = vperm.xlu0 %674, %v40_v3   ;;  %666 = vset.pattern.permute.xlu1 %v681_v0  ;;  %v864_v3 = vrot.slane %v37_v52, %v232_v61 }
  0x36   :  { %211 = vperm.xlu1 %666, %v41_v8  }
  0x39   :  { %271 = vperm.xlu0 %674, %v43_v17  }
  0x3a   :  { %667 = vset.pattern.permute.xlu1 %v682_v1 }
  0x3b   :  { %68 = vperm.xlu1 %667, %v24_v18  }
  0x3d   :  { %275 = vperm.xlu0 %674, %v44_v15  }
  0x3f   :  { %668 = vset.pattern.permute.xlu1 %v683_v7 }
  0x40   :  { %163 = vperm.xlu1 %668, %v42_v16  }
  0x41   :  { %679 = vset.pattern.permute.xlu0 %v682_v1 }
  0x42   :  { %320 = vperm.xlu0 %679, %v28_v25  }
  0x44   :  { %167 = vperm.xlu1 %668, %v43_v17  }
  0x46   :  { %335 = vperm.xlu0 %679, %v31_v29  }
  0x48   :  { %669 = vset.pattern.permute.xlu1 %v684_v14 }
  0x49   :  { %263 = vperm.xlu1 %669, %v41_v8  }
  0x4a   :  { %511 = vperm.xlu0 %679, %v497_v33  }
  0x4d   :  { %670 = vset.pattern.permute.xlu1 %v682_v1 }
  0x4e   :  { %118 = vperm.xlu1 %670, %v44_v15   ;;  %516 = vperm.xlu0 %679, %v498_v36  }
  0x52   :  { %671 = vset.pattern.permute.xlu1 %v681_v0  ;;  %521 = vperm.xlu0 %679, %v499_v40  }
  0x53   :  { %215 = vperm.xlu1 %671, %v42_v16  }
  0x56   :  { %526 = vperm.xlu0 %679, %v500_v45  }
  0x57   :  { %219 = vperm.xlu1 %671, %v43_v17  }
  0x5a   :  { %531 = vperm.xlu0 %679, %v501_v50  }
  0x5b   :  { %673 = vset.pattern.permute.xlu1 %v682_v1 }
  0x5c   :  { %83 = vperm.xlu1 %673, %v27_v19  }
  0x5e   :  { %541 = vperm.xlu0 %679, %v503_v56  }
  0x60   :  { %675 = vset.pattern.permute.xlu1 %v683_v7 }
  0x61   :  { %175 = vperm.xlu1 %675, %v45_v11  }
  0x65   :  { %676 = vset.pattern.permute.xlu1 %v684_v14 }
  0x66   :  { %267 = vperm.xlu1 %676, %v42_v16  }
  0x6a   :  { %677 = vset.pattern.permute.xlu1 %v681_v0 }
  0x6b   :  { %223 = vperm.xlu1 %677, %v44_v15  }
  0x6f   :  { %227 = vperm.xlu1 %677, %v45_v11  }
  0x73   :  { %678 = vset.pattern.permute.xlu1 %v684_v14 }
  0x74   :  { %279 = vperm.xlu1 %678, %v45_v11  }
  0x78   :  { %680 = vset.pattern.permute.xlu1 %v682_v1 }
  0x79   :  { %325 = vperm.xlu1 %680, %v29_v24  }
  0x7d   :  { %330 = vperm.xlu1 %680, %v30_v28  }
  0x81   :  { %v786_v22 = vpop.permute.xlu1 %48  ;;  %v788_v23 = vpop.permute.xlu0 %207  ;;  %506 = vperm.xlu1 %680, %v496_v32  }
  0x82   :  { %v236_v40 = vmul.f32 %v864_v3, %v788_v23 }
  0x85   :  { %v796_v26 = vpop.permute.xlu1 %53  ;;  %340 = vperm.xlu1 %680, %v32_v35  }
  0x86   :  { %v89_v27 = vpop.permute.xlu0 %88 }
  0x87   :  { %v130_v62 = vmul.f32 %v855_v57, %v89_v27 }
  0x89   :  { %345 = vperm.xlu1 %680, %v33_v39   ;;  %v138_v4 = vadd.f32 %v130_v62, %v786_v22 }
  0x8a   :  { %v152_v30 = vpop.permute.xlu1 %151  ;;  %v94_v31 = vpop.permute.xlu0 %93 }
  0x8b   :  { %v131_v5 = vmul.f32 %v855_v57, %v94_v31  ;;  %v183_v14 = vmul.f32 %v861_v63, %v152_v30 }
  0x8d   :  { %350 = vperm.xlu1 %680, %v34_v44   ;;  %v139_v10 = vadd.f32 %v131_v5, %v796_v26 }
  0x8e   :  { %v810_v34 = vpop.permute.xlu0 %103 }
  0x8f   :  { %v818_v37 = vpop.permute.xlu1 %98  ;;  %v191_v18 = vadd.f32 %v183_v14, %v139_v10  ;;  %v133_v35 = vmul.f32 %v855_v57, %v810_v34 }
  0x90   :  { %v132_v31 = vmul.f32 %v855_v57, %v818_v37 }
  0x91   :  { %355 = vperm.xlu1 %680, %v35_v49  }
  0x92   :  { %v820_v38 = vpop.permute.xlu0 %58 }
  0x93   :  { %v140_v36 = vadd.f32 %v132_v31, %v820_v38 }
  0x94   :  { %v200_v42 = vpop.permute.xlu1 %199 }
  0x95   :  { %536 = vperm.xlu1 %680, %v502_v55   ;;  %v234_v11 = vmul.f32 %v864_v3, %v200_v42 }
  0x96   :  { %v828_v43 = vpop.permute.xlu0 %73 }
  0x98   :  { %v204_v47 = vpop.permute.xlu1 %203 }
  0x99   :  { %567 = vperm.xlu1 %680, %v36_v60   ;;  %v235_v15 = vmul.f32 %v864_v3, %v204_v47 }
  0x9a   :  { %v836_v48 = vpop.permute.xlu0 %123 }
  0x9b   :  { %v243_v21 = vadd.f32 %v235_v15, %v191_v18 }
  0x9d   :  { %v64_v53 = vpop.permute.xlu1 %63 }
  0x9e   :  { %v847_v54 = vpop.permute.xlu0 %78  ;;  %v141_v45 = vadd.f32 %v133_v35, %v64_v53 }
  0xa2   :  { %v160_v59 = vpop.permute.xlu1 %159 }
  0xa3   :  { %v148_v0 = vpop.permute.xlu0 %147  ;;  %v185_v41 = vmul.f32 %v861_v63, %v160_v59 }
  0xa4   :  { %v182_v1 = vmul.f32 %v861_v63, %v148_v0 }
  0xa5   :  { %v193_v47 = vadd.f32 %v185_v41, %v141_v45  ;;  %v315_v45 = vld [vmem:[%s936_s2 + $0x28] sm:$0xff] }
  0xa6   :  { %v190_v8 = vadd.f32 %v182_v1, %v138_v4 }
  0xa7   :  { %v156_v6 = vpop.permute.xlu0 %155  ;;  %v252_v7 = vpop.permute.xlu1 %251 }
  0xa8   :  { %v242_v16 = vadd.f32 %v234_v11, %v190_v8  ;;  %v286_v17 = vmul.f32 %v868_v9, %v252_v7  ;;  %v184_v32 = vmul.f32 %v861_v63, %v156_v6 }
  0xaa   :  { %v294_v22 = vadd.f32 %v286_v17, %v242_v16  ;;  %v192_v42 = vadd.f32 %v184_v32, %v140_v36 }
  0xab   :  { %v172_v12 = vpop.permute.xlu0 %171 }
  0xac   :  { %v109_v13 = vpop.permute.xlu1 %108  ;;  %v302_v26 = vmax.f32 %v294_v22, 0.0  ;;  %v244_v49 = vadd.f32 %v236_v40, %v192_v42  ;;  %v188_v58 = vmul.f32 %v861_v63, %v172_v12 }
  0xad   :  { %v134_v8 = vmul.f32 %v855_v57, %v109_v13 }
  0xb0   :  { %v256_v19 = vpop.permute.xlu0 %255  ;;  %v114_v20 = vpop.permute.xlu1 %113 }
  0xb1   :  { %v287_v24 = vmul.f32 %v868_v9, %v256_v19  ;;  %v135_v1 = vmul.f32 %v855_v57, %v114_v20 }
  0xb3   :  { %v295_v25 = vadd.f32 %v287_v24, %v243_v21  ;;  %v143_v5 = vadd.f32 %v135_v1, %v828_v43 }
  0xb4   :  { %v260_v39 = vpop.permute.xlu0 %259 }
  0xb5   :  { %v303_v27 = vmax.f32 %v295_v25, 0.0  ;;  %v212_v28 = vpop.permute.xlu1 %211  ;;  %v288_v46 = vmul.f32 %v868_v9, %v260_v39 }
  0xb6   :  { %v237_v37 = vmul.f32 %v864_v3, %v212_v28 }
  0xb7   :  { %v628_v29 = vpack.c.bf16 %v303_v27, %v302_v26  ;;  %v296_v51 = vadd.f32 %v288_v46, %v244_v49  ;;  %v137_v27 = vmul.f32 %v855_v57, %v836_v48  ;;  %v316_v46 = vld [vmem:[%s936_s2 + $0x30] sm:$0xff] }
  0xb8   :  { %v245_v34 = vadd.f32 %v237_v37, %v193_v47  ;;  %v272_v7 = vpop.permute.xlu0 %271  ;;  %v313_v37 = vld [vmem:[%s936_s2 + $0x18] sm:$0xff] }
  0xb9   :  { %629 = vmatprep.subr.bf16.mxu0 %v628_v29  ;;  %644 = vmatprep.subr.bf16.mxu1 %v628_v29  ;;  %v304_v55 = vmax.f32 %v296_v51, 0.0  ;;  %v291_v16 = vmul.f32 %v868_v9, %v272_v7  ;;  %v317_v47 = vld [vmem:[%s936_s2 + $0x38] sm:$0xff] }
  0xba   :  { %v69_v30 = vpop.permute.xlu1 %68  ;;  %631 = vmatpush3.bf16.msra.mxu0 %v628_v29  ;;  %648 = vmatpush3.bf16.msra.mxu1 %v628_v29 }
  0xbb   :  { %v142_v12 = vadd.f32 %v134_v8, %v69_v30 }
  0xbc   :  { %v276_v30 = vpop.permute.xlu0 %275 }
  0xbd   :  { %v292_v36 = vmul.f32 %v868_v9, %v276_v30 }
  0xbf   :  { %v164_v33 = vpop.permute.xlu1 %163 }
  0xc3   :  { %v168_v44 = vpop.permute.xlu1 %167 }
  0xc4   :  { %v187_v4 = vmul.f32 %v861_v63, %v168_v44 }
  0xc6   :  { %v195_v10 = vadd.f32 %v187_v4, %v143_v5 }
  0xc8   :  { %v264_v50 = vpop.permute.xlu1 %263 }
  0xc9   :  { %v289_v38 = vmul.f32 %v868_v9, %v264_v50  ;;  %v321_v50 = vpop.permute.xlu0 %320 }
  0xcb   :  { %v297_v52 = vadd.f32 %v289_v38, %v245_v34 }
  0xcd   :  { %v305_v56 = vmax.f32 %v297_v52, 0.0  ;;  %v119_v23 = vpop.permute.xlu1 %118  ;;  %v336_v34 = vpop.permute.xlu0 %335 }
  0xce   :  { %v136_v59 = vmul.f32 %v855_v57, %v119_v23 }
  0xcf   :  { %v632_v53 = vpack.c.bf16 %v305_v56, %v304_v55 }
  0xd0   :  { %v144_v60 = vadd.f32 %v136_v59, %v847_v54  ;;  %v186_v54 = vmul.f32 %v861_v63, %v164_v33 }
  0xd1   :  { %633 = vmatprep.subr.bf16.mxu0 %v632_v53  ;;  %645 = vmatprep.subr.bf16.mxu1 %v632_v53  ;;  %v512_v52 = vpop.permute.xlu0 %511 }
  0xd2   :  { %v216_v61 = vpop.permute.xlu1 %215  ;;  %635 = vmatpush3.bf16.msra.mxu0 %v632_v53  ;;  %649 = vmatpush3.bf16.msra.mxu1 %v632_v53  ;;  %v196_v62 = vadd.f32 %v188_v58, %v144_v60  ;;  %v194_v17 = vadd.f32 %v186_v54, %v142_v12 }
  0xd3   :  { %v238_v14 = vmul.f32 %v864_v3, %v216_v61 }
  0xd5   :  { %v246_v19 = vadd.f32 %v238_v14, %v194_v17  ;;  %v517_v56 = vpop.permute.xlu0 %516 }
  0xd6   :  { %v220_v0 = vpop.permute.xlu1 %219 }
  0xd7   :  { %v239_v6 = vmul.f32 %v864_v3, %v220_v0 }
  0xd9   :  { %v247_v15 = vadd.f32 %v239_v6, %v195_v10  ;;  %v522_v58 = vpop.permute.xlu0 %521 }
  0xdb   :  { %v84_v2 = vpop.permute.xlu1 %83  ;;  %v299_v20 = vadd.f32 %v291_v16, %v247_v15 }
  0xdc   :  { %v145_v31 = vadd.f32 %v137_v27, %v84_v2 }
  0xdd   :  { %v307_v22 = vmax.f32 %v299_v20, 0.0  ;;  %v527_v15 = vpop.permute.xlu0 %526 }
  0xe0   :  { %v176_v11 = vpop.permute.xlu1 %175 }
  0xe1   :  { %v189_v28 = vmul.f32 %v861_v63, %v176_v11  ;;  %v532_v27 = vpop.permute.xlu0 %531 }
  0xe3   :  { %v197_v35 = vadd.f32 %v189_v28, %v145_v31 }
  0xe5   :  { %v268_v18 = vpop.permute.xlu1 %267 }
  0xe6   :  { %v290_v43 = vmul.f32 %v868_v9, %v268_v18 }
  0xe8   :  { %v298_v21 = vadd.f32 %v290_v43, %v246_v19 }
  0xea   :  { %v306_v24 = vmax.f32 %v298_v21, 0.0  ;;  %v224_v13 = vpop.permute.xlu1 %223 }
  0xeb   :  { %v240_v26 = vmul.f32 %v864_v3, %v224_v13 }
  0xec   :  { %v636_v25 = vpack.c.bf16 %v307_v22, %v306_v24 }
  0xed   :  { %v248_v32 = vadd.f32 %v240_v26, %v196_v62 }
  0xee   :  { %v228_v29 = vpop.permute.xlu1 %227  ;;  %637 = vmatprep.subr.bf16.mxu0 %v636_v25  ;;  %646 = vmatprep.subr.bf16.mxu1 %v636_v25 }
  0xef   :  { %639 = vmatpush3.bf16.msra.mxu0 %v636_v25  ;;  %650 = vmatpush3.bf16.msra.mxu1 %v636_v25  ;;  %v241_v33 = vmul.f32 %v864_v3, %v228_v29  ;;  %v300_v40 = vadd.f32 %v292_v36, %v248_v32  ;;  %v311_v3 = vld [vmem:[%s936_s2 + $0x8] sm:$0xff] }
  0xf1   :  { %v249_v41 = vadd.f32 %v241_v33, %v197_v35  ;;  %v308_v63 = vmax.f32 %v300_v40, 0.0  ;;  %v542_v40 = vpop.permute.xlu0 %541 }
  0xf3   :  { %v280_v39 = vpop.permute.xlu1 %279 }
  0xf4   :  { %v293_v48 = vmul.f32 %v868_v9, %v280_v39  ;;  %v312_v9 = vld [vmem:[%s936_s2 + $0x10] sm:$0xff] }
  0xf6   :  { %v301_v57 = vadd.f32 %v293_v48, %v249_v41 }
  0xf8   :  { %v309_v42 = vmax.f32 %v301_v57, 0.0  ;;  %v326_v49 = vpop.permute.xlu1 %325 }
  0xfa   :  { %v640_v44 = vpack.c.bf16 %v309_v42, %v308_v63 }
  0xfc   :  { %641 = vmatprep.subr.bf16.mxu0 %v640_v44  ;;  %647 = vmatprep.subr.bf16.mxu1 %v640_v44  ;;  %v331_v51 = vpop.permute.xlu1 %330 }
  0xfd   :  { %643 = vmatpush3.bf16.msra.mxu0 %v640_v44  ;;  %651 = vmatpush3.bf16.msra.mxu1 %v640_v44 }
 0x100   :  { %617 = vmatmul.mubr.msk.f32.vlgmr.msra.gmra.mrb[0].mxu0 %vm358_vm0, %v311_v3  ;;  %623 = vmatmul.mubr.msk.f32.vlgmr.msra.gmra.mrb[0].mxu1 %vm358_vm0, %v315_v45  ;;  %v507_v38 = vpop.permute.xlu1 %506 }
 0x101   :  { %619 = vmatprep.mubr.msk.f32.mxu0 %vm358_vm0, %v312_v9  ;;  %625 = vmatprep.mubr.msk.f32.mxu1 %vm358_vm0, %v316_v46 }
 0x104   :  { %620 = vmatmul.mubr.msk.f32.gmra.mrb[2].mxu0 %vm358_vm0, %v313_v37  ;;  %626 = vmatmul.mubr.msk.f32.gmra.mrb[2].mxu1 %vm358_vm0, %v317_v47  ;;  %v341_v55 = vpop.permute.xlu1 %340 }
 0x108   :  { %v346_v23 = vpop.permute.xlu1 %345 }
 0x10c   :  { %v351_v1 = vpop.permute.xlu1 %350 }
 0x110   :  { %v356_v22 = vpop.permute.xlu1 %355 }
 0x114   :  { %v537_v35 = vpop.permute.xlu1 %536 }
 0x118   :  { %v568_v46 = vpop.permute.xlu1 %567 }
 0x1d3   :  { %v618_v59 = vpop.f32.mrb[0].mxu0  ;;  %v624_v53 = vpop.f32.mrb[0].mxu1 }
 0x1d4   :  { %v455_v60 = vadd.f32 %v618_v59, %v326_v49  ;;  %v449_v61 = vpop.f32.mrb[1].mxu0  ;;  %v469_v62 = vpop.f32.mrb[1].mxu1  ;;  %v475_v16 = vadd.f32 %v624_v53, %v346_v23 }
 0x1d5   :  { %v450_v0 = vadd.f32 %v449_v61, %v321_v50  ;;  %v470_v12 = vadd.f32 %v469_v62, %v341_v55 }
 0x1d6   :  { %v489_v2 = vmax.f32 %v455_v60, 0.0  ;;  %v493_v24 = vmax.f32 %v475_v16, 0.0 }
 0x1d7   :  { %v488_v4 = vmax.f32 %v450_v0, 0.0  ;;  %v621_v5 = vpop.f32.mrb[2].mxu0  ;;  %v627_v6 = vpop.f32.mrb[2].mxu1  ;;  %v492_v20 = vmax.f32 %v470_v12, 0.0 }
 0x1d8   :  { %v545_v7 = vmul.f32 %v512_v52, %v489_v2  ;;  %v465_v8 = vadd.f32 %v621_v5, %v336_v34  ;;  %v459_v54 = vpop.f32.mrb[3].mxu0  ;;  %v479_v10 = vpop.f32.mrb[3].mxu1  ;;  %v485_v25 = vadd.f32 %v627_v6, %v356_v22  ;;  %v549_v31 = vmul.f32 %v532_v27, %v493_v24 }
 0x1d9   :  { %v544_v11 = vmul.f32 %v507_v38, %v488_v4  ;;  %v460_v14 = vadd.f32 %v459_v54, %v331_v51  ;;  %v480_v21 = vadd.f32 %v479_v10, %v351_v1  ;;  %v548_v28 = vmul.f32 %v527_v15, %v492_v20 }
 0x1da   :  { %v491_v18 = vmax.f32 %v465_v8, 0.0  ;;  %v495_v32 = vmax.f32 %v485_v25, 0.0 }
 0x1db   :  { %v552_v17 = vadd.f32 %v545_v7, %v544_v11  ;;  %v490_v19 = vmax.f32 %v460_v14, 0.0  ;;  %v494_v30 = vmax.f32 %v480_v21, 0.0 }
 0x1dc   :  { %v547_v13 = vmul.f32 %v522_v58, %v491_v18  ;;  %v551_v41 = vmul.f32 %v542_v40, %v495_v32 }
 0x1dd   :  { %v546_v43 = vmul.f32 %v517_v56, %v490_v19  ;;  %v550_v36 = vmul.f32 %v537_v35, %v494_v30 }
 0x1df   :  { %v553_v26 = vadd.f32 %v552_v17, %v546_v43 }
 0x1e1   :  { %v554_v29 = vadd.f32 %v553_v26, %v547_v13 }
 0x1e3   :  { %v555_v33 = vadd.f32 %v554_v29, %v548_v28 }
 0x1e5   :  { %v556_v39 = vadd.f32 %v555_v33, %v549_v31 }
 0x1e7   :  { %v557_v48 = vadd.f32 %v556_v39, %v550_v36 }
 0x1e9   :  { %v558_v57 = vadd.f32 %v557_v48, %v551_v41 }
 0x1eb   :  { %v559_v63 = vrot.slane %v558_v57, 4 }
 0x1ed   :  { %v560_v42 = vadd.f32 %v559_v63, %v558_v57 }
 0x1ef   :  { %v561_v44 = vrot.slane %v560_v42, 2 }
 0x1f1   :  { %v562_v3 = vadd.f32 %v561_v44, %v560_v42 }
 0x1f3   :  { %v563_v45 = vrot.slane %v562_v3, 1 }
 0x1f5   :  { %v564_v9 = vadd.f32 %v563_v45, %v562_v3 }
 0x1f7   :  { %v570_v37 = vadd.f32 %v568_v46, %v564_v9 }
 0x1f9   :  { %571 = vst [vmem:[%s939_s5] sm:$0x1] %v570_v37 }

</bundles_post_ra>
